<compile_context>
chip_gen: v5e
topology: v5e:2x2
jax: 0.10.0
libtpu: 0.0.40
codegen_flags: <defaults>
</compile_context>

<pallas_src>
import functools
import itertools

import numpy as np
import jax
import jax.numpy as jnp
from jax.experimental import pallas as pl
from jax.experimental.pallas import tpu as pltpu


# ----------------------------------------------------------------------------
# Pallas kernel: one [t_pad, bn] tile of the TRANSPOSED cost matrix C^T
# ----------------------------------------------------------------------------
def _cost_kernel(pbox_ref, tbox_ref, onehot_ref, c_ref, *, wc, wb, wg, t_chunks):
    pb = pbox_ref[...]                                    # [4, bn]: cx, cy, w, h

    # ---- class probabilities: softmax over the 4 real channels only --------
    # Exact divide on a single [1, bn] row (cheap, keeps assignment stable);
    # (-wc) is folded in here so the MXU dot below yields wc*cost_class.
    m = jnp.max(pb, axis=0, keepdims=True)                # [1, bn]
    e = jnp.exp(pb - m)                                   # [4, bn]   (EUP)
    denom = jnp.sum(e, axis=0, keepdims=True)             # [1, bn]
    scaled_p = (e * ((-wc) / denom)).astype(jnp.bfloat16)  # [4, bn] bf16

    # ---- prediction boxes cxcywh -> xyxy; all [1, bn] rows ------------------
    cx, cy, w, h = pb[0:1, :], pb[1:2, :], pb[2:3, :], pb[3:4, :]
    ox0, ox1 = cx - 0.5 * w, cx + 0.5 * w
    oy0, oy1 = cy - 0.5 * h, cy + 0.5 * h
    o_minx, o_maxx = jnp.minimum(ox0, ox1), jnp.maximum(ox0, ox1)
    o_miny, o_maxy = jnp.minimum(oy0, oy1), jnp.maximum(oy0, oy1)
    area1 = (o_maxx - o_minx) * (o_maxy - o_miny)         # [1, bn]

    # ---- targets in 8-sublane chunks: keeps live temporaries at [8, bn] -----
    # TODO(synk): for very large T (hundreds of chunks) switch this static
    # unroll to lax.fori_loop with a dynamic pl.ds to bound code size.
    for tc in range(t_chunks):
        r0 = tc * 8
        tb = tbox_ref[pl.ds(r0, 8), :]                    # [8, 4] xyxy
        t_minx, t_miny = tb[:, 0:1], tb[:, 1:2]           # [8, 1]
        t_maxx, t_maxy = tb[:, 2:3], tb[:, 3:4]
        oh = onehot_ref[pl.ds(r0, 8), :].astype(jnp.bfloat16)   # [8, 4]

        # wc*cost_class for this 8-target chunk: one small bf16 MXU matmul
        acc = jnp.dot(oh, scaled_p, preferred_element_type=jnp.float32)  # [8, bn]

        # cost_bbox: pairwise L1 over the 4 box coords
        l1 = (jnp.abs(o_minx - t_minx) + jnp.abs(o_miny - t_miny)
              + jnp.abs(o_maxx - t_maxx) + jnp.abs(o_maxy - t_maxy))
        acc = acc + (l1 if wb == 1.0 else wb * l1)

        # cost_giou = -generalized_box_iou (approx reciprocals on the EUP)
        inter = (jnp.maximum(jnp.minimum(o_maxx, t_maxx) - jnp.maximum(o_minx, t_minx), 0.0)
                 * jnp.maximum(jnp.minimum(o_maxy, t_maxy) - jnp.maximum(o_miny, t_miny), 0.0))
        area2 = (t_maxx - t_minx) * (t_maxy - t_miny)     # [8, 1]
        union = (area1 + area2) - inter                   # [8, bn]
        enc = (jnp.maximum(jnp.maximum(o_maxx, t_maxx) - jnp.minimum(o_minx, t_minx), 0.0)
               * jnp.maximum(jnp.maximum(o_maxy, t_maxy) - jnp.minimum(o_miny, t_miny), 0.0))
        giou = (inter * pl.reciprocal(union, approx=True)
                - (enc - union) * pl.reciprocal(enc, approx=True))
        acc = acc - (giou if wg == 1.0 else wg * giou)

        c_ref[pl.ds(r0, 8), :] = acc                      # full unmasked store


# ----------------------------------------------------------------------------
# Plain-XLA fallback for very small problems (launch overhead dominates there)
# ----------------------------------------------------------------------------
def _cost_matrix_xla_t(pred_box, tgt_bbox, tgt_ids, wc, wb, wg):
    # Returns C^T of shape [T, N].  Only used at tiny sizes, so the trailing
    # transpose is negligible by construction.
    B, Q = pred_box.shape[:2]
    out = pred_box[:, :, 12:16].reshape(B * Q, 4).astype(jnp.float32)
    p = jax.nn.softmax(out, axis=-1)
    cost_class = -p[:, tgt_ids]
    cx, cy, w, h = out[:, 0], out[:, 1], out[:, 2], out[:, 3]
    ox0, ox1 = cx - 0.5 * w, cx + 0.5 * w
    oy0, oy1 = cy - 0.5 * h, cy + 0.5 * h
    obox = jnp.stack([jnp.minimum(ox0, ox1), jnp.minimum(oy0, oy1),
                      jnp.maximum(ox0, ox1), jnp.maximum(oy0, oy1)], 1)
    tb = tgt_bbox.astype(jnp.float32)
    tbox = jnp.stack([jnp.minimum(tb[:, 0], tb[:, 4]), jnp.minimum(tb[:, 1], tb[:, 5]),
                      jnp.maximum(tb[:, 0], tb[:, 4]), jnp.maximum(tb[:, 1], tb[:, 5])], 1)
    cost_bbox = jnp.abs(obox[:, None, :] - tbox[None, :, :]).sum(-1)
    a1 = (obox[:, 2] - obox[:, 0]) * (obox[:, 3] - obox[:, 1])
    a2 = (tbox[:, 2] - tbox[:, 0]) * (tbox[:, 3] - tbox[:, 1])
    lt = jnp.maximum(obox[:, None, :2], tbox[None, :, :2])
    rb = jnp.minimum(obox[:, None, 2:], tbox[None, :, 2:])
    wh = jnp.clip(rb - lt, 0.0, None)
    inter = wh[..., 0] * wh[..., 1]
    union = a1[:, None] + a2[None, :] - inter
    iou = inter / union
    lt_e = jnp.minimum(obox[:, None, :2], tbox[None, :, :2])
    rb_e = jnp.maximum(obox[:, None, 2:], tbox[None, :, 2:])
    wh_e = jnp.clip(rb_e - lt_e, 0.0, None)
    enc = wh_e[..., 0] * wh_e[..., 1]
    giou = iou - (enc - union) / enc
    return (wb * cost_bbox + wc * cost_class - wg * giou).T


# ----------------------------------------------------------------------------
# Wrapper: padding / layout plumbing + pallas_call.  Returns C^T.
# ----------------------------------------------------------------------------
def hungarian_cost_matrix_t(pred_box, tgt_bbox, tgt_ids,
                            cost_class=1.0, cost_bbox=1.0, cost_giou=1.0,
                            block_n=512, min_pallas_elems=(1 << 17)):
    """Returns the TRANSPOSED matching cost matrix C^T.

    Pallas path: padded [t_pad, n_pad] device array (slice [:T, :N] on host).
    XLA fallback (tiny problems): exact [T, N].
    """
    B, Q = pred_box.shape[:2]
    N = B * Q
    T = int(tgt_bbox.shape[0])
    wc, wb, wg = float(cost_class), float(cost_bbox), float(cost_giou)

    if T == 0:
        return jnp.zeros((0, N), jnp.float32)
    if N * T < min_pallas_elems:
        # launch + host-sync overhead dominates at small sizes; let XLA fuse it
        return _cost_matrix_xla_t(pred_box, tgt_bbox, tgt_ids, wc, wb, wg)

    # -- block-size selection -------------------------------------------------
    t_pad = ((T + 7) // 8) * 8                               # sublane-aligned T
    n128 = ((N + 127) // 128) * 128
    bn = max(128, (min(int(block_n), n128) // 128) * 128)
    # v7x: guarantee >= 2 grid steps when N allows it so the "parallel" axis
    # actually feeds both TensorCores (VMEM is never the constraint here).
    if n128 // bn < 2 and n128 >= 256:
        bn = max(128, ((n128 // 2) // 128) * 128)
    n_pad = ((n128 + bn - 1) // bn) * bn

    # -- predictions: channel select, transpose to lane-dense [4, n_pad] ------
    out4 = pred_box[:, :, 12:16].reshape(N, 4).astype(jnp.float32)   # [N, 4]
    pbox4 = jnp.pad(out4.T, ((0, 0), (0, n_pad - N)))                # [4, n_pad]

    # -- targets: xyxy boxes + depth-4 one-hot over the softmax channels ------
    tb = tgt_bbox.astype(jnp.float32)
    tbox = jnp.stack([jnp.minimum(tb[:, 0], tb[:, 4]),
                      jnp.minimum(tb[:, 1], tb[:, 5]),
                      jnp.maximum(tb[:, 0], tb[:, 4]),
                      jnp.maximum(tb[:, 1], tb[:, 5])], axis=1)      # [T, 4]
    tbox = jnp.pad(tbox, ((0, t_pad - T), (0, 0)))                   # [t_pad, 4]
    # NOTE: target ids must be < 4 (matcher only emits 1 / 2).
    onehot = jax.nn.one_hot(tgt_ids, 4, dtype=jnp.float32)           # [T, 4]
    onehot = jnp.pad(onehot, ((0, t_pad - T), (0, 0)))               # [t_pad, 4]

    kernel = functools.partial(_cost_kernel, wc=wc, wb=wb, wg=wg,
                               t_chunks=t_pad // 8)

    return pl.pallas_call(
        kernel,
        out_shape=jax.ShapeDtypeStruct((t_pad, n_pad), jnp.float32),
        grid_spec=pl.GridSpec(
            grid=(n_pad // bn,),
            in_specs=[pl.BlockSpec((4, bn), lambda i: (0, i)),       # predictions tile
                      pl.BlockSpec((t_pad, 4), lambda i: (0, 0)),    # target boxes (resident)
                      pl.BlockSpec((t_pad, 4), lambda i: (0, 0))],   # one-hot (resident)
            out_specs=pl.BlockSpec((t_pad, bn), lambda i: (0, i)),
        ),
        compiler_params=pltpu.CompilerParams(
            dimension_semantics=("parallel",)),                      # megacore shard on v7x
    )(pbox4, tbox, onehot)


# ----------------------------------------------------------------------------
# Host-side glue: flatten the target list, final Hungarian assignment
# ----------------------------------------------------------------------------
def _build_target_arrays(targets, batch_size):
    rows, ids, sizes = [], [], []
    for i in range(batch_size):
        a = np.asarray(targets[i + 1])                 # [1, 1+n_a, 8]
        b = np.asarray(targets[i + batch_size + 1])    # [1, 1+n_b, 8]
        na, nb = a.shape[1] - 1, b.shape[1] - 1
        if na > 0:
            rows.append(a[0, 1:]); ids.extend([1] * na)
        if nb > 0:
            rows.append(b[0, 1:]); ids.extend([2] * nb)
        sizes.append(na + nb)
    tgt_bbox = (np.concatenate(rows, axis=0) if rows else np.zeros((0, 8), np.float32))
    return (jnp.asarray(tgt_bbox, jnp.float32),
            jnp.asarray(np.asarray(ids, np.int32)),
            sizes)


def _lsa_bruteforce(cost):
    # exact min-cost assignment for tiny rectangular matrices (rows >= cols here)
    cost = np.asarray(cost)
    n_rows, n_cols = cost.shape
    best, best_val = None, np.inf
    for perm in itertools.permutations(range(n_rows), n_cols):
        v = sum(cost[perm[j], j] for j in range(n_cols))
        if v < best_val:
            best_val, best = v, perm
    rows = np.asarray(best)
    cols = np.arange(n_cols)
    order = np.argsort(rows)
    return rows[order], cols[order]


try:
    from scipy.optimize import linear_sum_assignment as _lsa  # noqa: F401
except Exception:  # pragma: no cover
    _lsa = _lsa_bruteforce
# TODO(synk): linear_sum_assignment (sequential Hungarian algorithm) has no clean
# Pallas/TPU equivalent; it is executed on the host on the kernel-produced cost matrix.


def hungarian_matcher_forward(outputs, targets, batch_size,
                              cost_class=1.0, cost_bbox=1.0, cost_giou=1.0,
                              min_pallas_elems=(1 << 17)):
    pred_box = outputs['pred_box']
    B, Q = pred_box.shape[:2]
    tgt_bbox, tgt_ids, sizes = _build_target_arrays(targets, batch_size)
    T = int(tgt_bbox.shape[0])

    if T == 0:
        indices = [(np.array([-1]), np.array([-1])) for _ in range(batch_size)]
        return ([(np.asarray(i, np.int64), np.asarray(j, np.int64)) for i, j in indices],
                np.zeros((B, Q, 0), np.float32))

    ct_dev = hungarian_cost_matrix_t(pred_box, tgt_bbox, tgt_ids,
                                     cost_class, cost_bbox, cost_giou,
                                     min_pallas_elems=min_pallas_elems)
    # Host-side slice of the padded C^T; transpose/reshape happen in numpy
    # (cheap views / small host copies) instead of on the device.
    ct = np.asarray(jax.block_until_ready(ct_dev))[:T, :B * Q]        # [T, N]
    C = np.ascontiguousarray(ct.T).reshape(B, Q, T)                   # for inspection

    offsets = np.concatenate(([0], np.cumsum(sizes)))
    indices = []
    for i in range(batch_size):
        s, e = int(offsets[i]), int(offsets[i + 1])
        if sizes[i] != 0:
            c_i = ct[s:e, i * Q:(i + 1) * Q].T          # [Q, size_i] numpy view
            indices.append(_lsa(c_i))
        else:
            indices.append((np.array([-1]), np.array([-1])))
    return [(np.asarray(i, np.int64), np.asarray(j, np.int64)) for i, j in indices], C


# ----------------------------------------------------------------------------
# numpy reference for the cost matrix (for a correctness check)
# ----------------------------------------------------------------------------
def _reference_cost_matrix(pred_box, tgt_bbox, tgt_ids, wc=1.0, wb=1.0, wg=1.0):
    B, Q = pred_box.shape[:2]
    out = np.asarray(pred_box)[:, :, 12:16].reshape(B * Q, 4).astype(np.float32)
    tgt = np.asarray(tgt_bbox, np.float32)
    ids = np.asarray(tgt_ids, np.int64)
    e = np.exp(out - out.max(-1, keepdims=True))
    prob = e / e.sum(-1, keepdims=True)
    cost_class = -prob[:, ids]
    cx, cy, w, h = out[:, 0], out[:, 1], out[:, 2], out[:, 3]
    ox = np.stack([cx - 0.5 * w, cx + 0.5 * w], 1)
    oy = np.stack([cy - 0.5 * h, cy + 0.5 * h], 1)
    obox = np.stack([ox.min(1), oy.min(1), ox.max(1), oy.max(1)], 1)
    tx, ty = tgt[:, [0, 4]], tgt[:, [1, 5]]
    tbox = np.stack([tx.min(1), ty.min(1), tx.max(1), ty.max(1)], 1)
    cost_bbox = np.abs(obox[:, None, :] - tbox[None, :, :]).sum(-1)
    a1 = (obox[:, 2] - obox[:, 0]) * (obox[:, 3] - obox[:, 1])
    a2 = (tbox[:, 2] - tbox[:, 0]) * (tbox[:, 3] - tbox[:, 1])
    lt = np.maximum(obox[:, None, :2], tbox[None, :, :2])
    rb = np.minimum(obox[:, None, 2:], tbox[None, :, 2:])
    wh = np.clip(rb - lt, 0, None)
    inter = wh[..., 0] * wh[..., 1]
    union = a1[:, None] + a2[None, :] - inter
    iou = inter / union
    lt_e = np.minimum(obox[:, None, :2], tbox[None, :, :2])
    rb_e = np.maximum(obox[:, None, 2:], tbox[None, :, 2:])
    wh_e = np.clip(rb_e - lt_e, 0, None)
    enc = wh_e[..., 0] * wh_e[..., 1]
    giou = iou - (enc - union) / enc
    C = wb * cost_bbox + wc * cost_class + wg * (-giou)
    return C.reshape(B, Q, -1)


# ----------------------------------------------------------------------------
if __name__ == "__main__":
    key = jax.random.PRNGKey(0)
    B, Q, C_box = 2, 8, 16          # small shapes consistent with the module
    k1, k2, k3, k4 = jax.random.split(key, 4)

    pred_box = jax.random.normal(k1, (B, Q, C_box), jnp.float32)
    outputs = {'pred_box': pred_box}

    # targets: [images, slots_b0, slots_b1, ignored_b0, ignored_b1]
    # first row (index 0 along dim 1) of each target tensor is skipped by the matcher.
    targets = [
        jax.random.normal(k2, (B, 3, 16, 16), jnp.float32),                 # batch images (unused)
        jax.random.uniform(k3, (1, 4, 8), jnp.float32, 0.0, 16.0),          # 3 parking slots (batch 0)
        jax.random.uniform(k4, (1, 3, 8), jnp.float32, 0.0, 16.0),          # 2 parking slots (batch 1)
        jax.random.uniform(jax.random.fold_in(key, 7), (1, 2, 8), jnp.float32, 0.0, 16.0),  # 1 ignored (b0)
        jnp.zeros((1, 1, 8), jnp.float32),                                  # 0 ignored (batch 1)
    ]

    # min_pallas_elems=0 forces the Pallas path even at these tiny demo shapes
    indices, C = hungarian_matcher_forward(outputs, targets, batch_size=B,
                                           cost_class=1.0, cost_bbox=1.0, cost_giou=1.0,
                                           min_pallas_elems=0)

    # correctness check of the Pallas-computed cost matrix against a numpy reference
    # (tolerance covers the EUP approx reciprocals and the bf16 class-cost matmul)
    tgt_bbox, tgt_ids, _ = _build_target_arrays(targets, B)
    C_ref = _reference_cost_matrix(pred_box, tgt_bbox, tgt_ids)
    np.testing.assert_allclose(np.asarray(C), C_ref, rtol=1e-2, atol=1e-2)

    print("KERNEL_OK")
</pallas_src>

<mosaic_0001>
module attributes {stable_mosaic.version = 11 : i64} {
  func.func @_cost_kernel(%arg0: i32, %arg1: memref<4x128xf32, #tpu.memory_space<vmem>>, %arg2: memref<8x4xf32, #tpu.memory_space<vmem>>, %arg3: memref<8x4xf32, #tpu.memory_space<vmem>>, %arg4: memref<8x128xf32, #tpu.memory_space<vmem>>) attributes {dimension_semantics = [#tpu.dimension_semantics<parallel>], iteration_bounds = array<i64: 1>, scalar_prefetch = 0 : i64, scratch_operands = 0 : i64, tpu.core_type = #tpu.core_type<tc>, window_params = [{transform_indices = @transform_0, window_bounds = array<i64: 4, 128>}, {pipeline_mode = #tpu.pipeline_mode<synchronous>, transform_indices = @transform_1, window_bounds = array<i64: 8, 4>}, {pipeline_mode = #tpu.pipeline_mode<synchronous>, transform_indices = @transform_2, window_bounds = array<i64: 8, 4>}, {transform_indices = @transform_3, window_bounds = array<i64: 8, 128>}]} {
    %c0 = arith.constant 0 : index
    %c0_0 = arith.constant 0 : index
    %0 = vector.load %arg1[%c0, %c0_0] : memref<4x128xf32, #tpu.memory_space<vmem>>, vector<4x128xf32>
    %cst = arith.constant dense<0xFF800000> : vector<128xf32>
    %1 = vector.multi_reduction <maximumf>, %0, %cst [0] : vector<4x128xf32> to vector<128xf32>
    %2 = vector.shape_cast %1 : vector<128xf32> to vector<1x128xf32>
    %3 = vector.broadcast %2 : vector<1x128xf32> to vector<4x128xf32>
    %4 = arith.subf %0, %3 : vector<4x128xf32>
    %5 = math.exp %4 : vector<4x128xf32>
    %cst_1 = arith.constant dense<0.000000e+00> : vector<128xf32>
    %6 = vector.multi_reduction <add>, %5, %cst_1 [0] : vector<4x128xf32> to vector<128xf32>
    %7 = vector.shape_cast %6 : vector<128xf32> to vector<1x128xf32>
    %cst_2 = arith.constant -1.000000e+00 : f32
    %8 = vector.broadcast %cst_2 : f32 to vector<1x128xf32>
    %9 = arith.divf %8, %7 : vector<1x128xf32>
    %10 = vector.broadcast %9 : vector<1x128xf32> to vector<4x128xf32>
    %11 = arith.mulf %5, %10 : vector<4x128xf32>
    %12 = arith.truncf %11 : vector<4x128xf32> to vector<4x128xbf16>
    %13 = vector.extract_strided_slice %0 {offsets = [0, 0], sizes = [1, 128], strides = [1, 1]} : vector<4x128xf32> to vector<1x128xf32>
    %14 = vector.extract_strided_slice %0 {offsets = [1, 0], sizes = [1, 128], strides = [1, 1]} : vector<4x128xf32> to vector<1x128xf32>
    %15 = vector.extract_strided_slice %0 {offsets = [2, 0], sizes = [1, 128], strides = [1, 1]} : vector<4x128xf32> to vector<1x128xf32>
    %16 = vector.extract_strided_slice %0 {offsets = [3, 0], sizes = [1, 128], strides = [1, 1]} : vector<4x128xf32> to vector<1x128xf32>
    %cst_3 = arith.constant 5.000000e-01 : f32
    %17 = vector.broadcast %cst_3 : f32 to vector<1x128xf32>
    %18 = arith.mulf %17, %15 : vector<1x128xf32>
    %19 = arith.subf %13, %18 : vector<1x128xf32>
    %cst_4 = arith.constant 5.000000e-01 : f32
    %20 = vector.broadcast %cst_4 : f32 to vector<1x128xf32>
    %21 = arith.mulf %20, %15 : vector<1x128xf32>
    %22 = arith.addf %13, %21 : vector<1x128xf32>
    %cst_5 = arith.constant 5.000000e-01 : f32
    %23 = vector.broadcast %cst_5 : f32 to vector<1x128xf32>
    %24 = arith.mulf %23, %16 : vector<1x128xf32>
    %25 = arith.subf %14, %24 : vector<1x128xf32>
    %cst_6 = arith.constant 5.000000e-01 : f32
    %26 = vector.broadcast %cst_6 : f32 to vector<1x128xf32>
    %27 = arith.mulf %26, %16 : vector<1x128xf32>
    %28 = arith.addf %14, %27 : vector<1x128xf32>
    %29 = arith.minimumf %19, %22 : vector<1x128xf32>
    %30 = arith.maximumf %19, %22 : vector<1x128xf32>
    %31 = arith.minimumf %25, %28 : vector<1x128xf32>
    %32 = arith.maximumf %25, %28 : vector<1x128xf32>
    %33 = arith.subf %30, %29 : vector<1x128xf32>
    %34 = arith.subf %32, %31 : vector<1x128xf32>
    %35 = arith.mulf %33, %34 : vector<1x128xf32>
    %c0_7 = arith.constant 0 : index
    %c0_8 = arith.constant 0 : index
    %36 = vector.load %arg2[%c0_7, %c0_8] : memref<8x4xf32, #tpu.memory_space<vmem>>, vector<8x4xf32>
    %37 = vector.extract_strided_slice %36 {offsets = [0, 0], sizes = [8, 1], strides = [1, 1]} : vector<8x4xf32> to vector<8x1xf32>
    %38 = vector.extract_strided_slice %36 {offsets = [0, 1], sizes = [8, 1], strides = [1, 1]} : vector<8x4xf32> to vector<8x1xf32>
    %39 = vector.extract_strided_slice %36 {offsets = [0, 2], sizes = [8, 1], strides = [1, 1]} : vector<8x4xf32> to vector<8x1xf32>
    %40 = vector.extract_strided_slice %36 {offsets = [0, 3], sizes = [8, 1], strides = [1, 1]} : vector<8x4xf32> to vector<8x1xf32>
    %c0_9 = arith.constant 0 : index
    %c0_10 = arith.constant 0 : index
    %41 = vector.load %arg3[%c0_9, %c0_10] : memref<8x4xf32, #tpu.memory_space<vmem>>, vector<8x4xf32>
    %42 = arith.truncf %41 : vector<8x4xf32> to vector<8x4xbf16>
    %cst_11 = arith.constant dense<0.000000e+00> : vector<8x128xf32>
    %43 = tpu.matmul %42, %12, %cst_11 {dimension_numbers = #tpu.dot_dimension_numbers<[1], [0], [0], [1], [0, 0, 1, 1], [], []>} : vector<8x4xbf16>, vector<4x128xbf16>, vector<8x128xf32> -> vector<8x128xf32>
    %44 = vector.broadcast %29 : vector<1x128xf32> to vector<8x128xf32>
    %45 = vector.broadcast %37 : vector<8x1xf32> to vector<8x128xf32>
    %46 = arith.subf %44, %45 : vector<8x128xf32>
    %47 = math.absf %46 : vector<8x128xf32>
    %48 = vector.broadcast %31 : vector<1x128xf32> to vector<8x128xf32>
    %49 = vector.broadcast %38 : vector<8x1xf32> to vector<8x128xf32>
    %50 = arith.subf %48, %49 : vector<8x128xf32>
    %51 = math.absf %50 : vector<8x128xf32>
    %52 = arith.addf %47, %51 : vector<8x128xf32>
    %53 = vector.broadcast %30 : vector<1x128xf32> to vector<8x128xf32>
    %54 = vector.broadcast %39 : vector<8x1xf32> to vector<8x128xf32>
    %55 = arith.subf %53, %54 : vector<8x128xf32>
    %56 = math.absf %55 : vector<8x128xf32>
    %57 = arith.addf %52, %56 : vector<8x128xf32>
    %58 = vector.broadcast %32 : vector<1x128xf32> to vector<8x128xf32>
    %59 = vector.broadcast %40 : vector<8x1xf32> to vector<8x128xf32>
    %60 = arith.subf %58, %59 : vector<8x128xf32>
    %61 = math.absf %60 : vector<8x128xf32>
    %62 = arith.addf %57, %61 : vector<8x128xf32>
    %63 = arith.addf %43, %62 : vector<8x128xf32>
    %64 = vector.broadcast %30 : vector<1x128xf32> to vector<8x128xf32>
    %65 = vector.broadcast %39 : vector<8x1xf32> to vector<8x128xf32>
    %66 = arith.minimumf %64, %65 : vector<8x128xf32>
    %67 = vector.broadcast %29 : vector<1x128xf32> to vector<8x128xf32>
    %68 = vector.broadcast %37 : vector<8x1xf32> to vector<8x128xf32>
    %69 = arith.maximumf %67, %68 : vector<8x128xf32>
    %70 = arith.subf %66, %69 : vector<8x128xf32>
    %cst_12 = arith.constant 0.000000e+00 : f32
    %71 = vector.broadcast %cst_12 : f32 to vector<8x128xf32>
    %72 = arith.maximumf %70, %71 : vector<8x128xf32>
    %73 = vector.broadcast %32 : vector<1x128xf32> to vector<8x128xf32>
    %74 = vector.broadcast %40 : vector<8x1xf32> to vector<8x128xf32>
    %75 = arith.minimumf %73, %74 : vector<8x128xf32>
    %76 = vector.broadcast %31 : vector<1x128xf32> to vector<8x128xf32>
    %77 = vector.broadcast %38 : vector<8x1xf32> to vector<8x128xf32>
    %78 = arith.maximumf %76, %77 : vector<8x128xf32>
    %79 = arith.subf %75, %78 : vector<8x128xf32>
    %cst_13 = arith.constant 0.000000e+00 : f32
    %80 = vector.broadcast %cst_13 : f32 to vector<8x128xf32>
    %81 = arith.maximumf %79, %80 : vector<8x128xf32>
    %82 = arith.mulf %72, %81 : vector<8x128xf32>
    %83 = arith.subf %39, %37 : vector<8x1xf32>
    %84 = arith.subf %40, %38 : vector<8x1xf32>
    %85 = arith.mulf %83, %84 : vector<8x1xf32>
    %86 = vector.broadcast %35 : vector<1x128xf32> to vector<8x128xf32>
    %87 = vector.broadcast %85 : vector<8x1xf32> to vector<8x128xf32>
    %88 = arith.addf %86, %87 : vector<8x128xf32>
    %89 = arith.subf %88, %82 : vector<8x128xf32>
    %90 = vector.broadcast %30 : vector<1x128xf32> to vector<8x128xf32>
    %91 = vector.broadcast %39 : vector<8x1xf32> to vector<8x128xf32>
    %92 = arith.maximumf %90, %91 : vector<8x128xf32>
    %93 = vector.broadcast %29 : vector<1x128xf32> to vector<8x128xf32>
    %94 = vector.broadcast %37 : vector<8x1xf32> to vector<8x128xf32>
    %95 = arith.minimumf %93, %94 : vector<8x128xf32>
    %96 = arith.subf %92, %95 : vector<8x128xf32>
    %cst_14 = arith.constant 0.000000e+00 : f32
    %97 = vector.broadcast %cst_14 : f32 to vector<8x128xf32>
    %98 = arith.maximumf %96, %97 : vector<8x128xf32>
    %99 = vector.broadcast %32 : vector<1x128xf32> to vector<8x128xf32>
    %100 = vector.broadcast %40 : vector<8x1xf32> to vector<8x128xf32>
    %101 = arith.maximumf %99, %100 : vector<8x128xf32>
    %102 = vector.broadcast %31 : vector<1x128xf32> to vector<8x128xf32>
    %103 = vector.broadcast %38 : vector<8x1xf32> to vector<8x128xf32>
    %104 = arith.minimumf %102, %103 : vector<8x128xf32>
    %105 = arith.subf %101, %104 : vector<8x128xf32>
    %cst_15 = arith.constant 0.000000e+00 : f32
    %106 = vector.broadcast %cst_15 : f32 to vector<8x128xf32>
    %107 = arith.maximumf %105, %106 : vector<8x128xf32>
    %108 = arith.mulf %98, %107 : vector<8x128xf32>
    %109 = tpu.reciprocal %89 {approx = true} : vector<8x128xf32> -> vector<8x128xf32>
    %110 = arith.mulf %82, %109 : vector<8x128xf32>
    %111 = arith.subf %108, %89 : vector<8x128xf32>
    %112 = tpu.reciprocal %108 {approx = true} : vector<8x128xf32> -> vector<8x128xf32>
    %113 = arith.mulf %111, %112 : vector<8x128xf32>
    %114 = arith.subf %110, %113 : vector<8x128xf32>
    %115 = arith.subf %63, %114 : vector<8x128xf32>
    %c0_16 = arith.constant 0 : index
    %c0_17 = arith.constant 0 : index
    %116 = vector.load %arg4[%c0_16, %c0_17] : memref<8x128xf32, #tpu.memory_space<vmem>>, vector<8x128xf32>
    tpu.vector_store %arg4[%c0_16, %c0_17], %115 {strides = array<i32>} : memref<8x128xf32, #tpu.memory_space<vmem>>, vector<8x128xf32>,
    return
  }
  func.func @transform_0(%arg0: i32) -> (i32, i32) {
    %c0_i32 = arith.constant 0 : i32
    %c0_i32_0 = arith.constant 0 : i32
    return %c0_i32, %arg0 : i32, i32
  }
  func.func @transform_1(%arg0: i32) -> (i32, i32) {
    %c0_i32 = arith.constant 0 : i32
    %c0_i32_0 = arith.constant 0 : i32
    %c0_i32_1 = arith.constant 0 : i32
    return %c0_i32, %c0_i32_0 : i32, i32
  }
  func.func @transform_2(%arg0: i32) -> (i32, i32) {
    %c0_i32 = arith.constant 0 : i32
    %c0_i32_0 = arith.constant 0 : i32
    %c0_i32_1 = arith.constant 0 : i32
    return %c0_i32, %c0_i32_0 : i32, i32
  }
  func.func @transform_3(%arg0: i32) -> (i32, i32) {
    %c0_i32 = arith.constant 0 : i32
    %c0_i32_0 = arith.constant 0 : i32
    return %c0_i32, %arg0 : i32, i32
  }
}

</mosaic_0001>

<bundles_post_ra>
// kernel: tpu_custom_call.1
= control target key start
LH: loop header
LB: loop body
LE: loop exit
PB: predicated region body
PF: predicated region fallthrough
CT: control target
= control target key end

     0   :  { %s281_s0 = inlined_call_operand.vmem [shape: f32[4,128], index: 0, kind: input, shape index: {}]   ;;  %s282_s1 = inlined_call_operand.vmem [shape: f32[8,4], index: 1, kind: input, shape index: {}]   ;;  %s283_s2 = inlined_call_operand.vmem [shape: f32[8,4], index: 2, kind: input, shape index: {}]   ;;  %s284_s3 = inlined_call_operand.hbm [shape: f32[8,128], index: 3, kind: output, shape index: {}]  }
   0x1   :  { %v257_v0 = vld [vmem:[%s282_s1] sm:$0xff] }
   0x2   :  { %8 = vsyncpa [#allocation3], 0  ;;  %s227_s14 = smov 2   ;;  %v263_v1 = vld [vmem:[%s281_s0] sm:$0xf]  ;;  %vm17_vm0 = vcmask 1043456  }
   0x3   :  { %130 = vrot.lane.b32.xlu0 %v257_v0, %s227_s14  ;;  %v228_v2 = vmov 0   ;;  %v18_v3 = vsel %vm17_vm0, %v263_v1, -inf  ;;  %v229_v19 = vmov 1   ;;  %s230_s0 = smov 127   ;;  %vm104_vm5 = vcmask 1041408   ;;  %v66_v35 = vld [vmem:[%s283_s2] sm:$0xff] }
   0x4   :  { %188 = vset.pattern.permute.xlu1 %v228_v2  ;;  %v19_v4 = vrot.slane %v18_v3, 4  ;;  %v67_v38 = vpack.c.bf16 %v66_v35, %v66_v35  ;;  %vm100_vm6 = vcmask 31744   ;;  %v231_v39 = vmov 2   ;;  %s233_s2 = smov [#allocation2]   ;;  %s171_s21 = sshll.u32 %s284_s3, 4  ;;  %s172_s21 = int_to_ptr.hbm [resolvable:$true] %s171_s21 }
   0x5   :  { %71 = vperm.xlu1 %188, %v257_v0   ;;  %192 = vset.pattern.permute.xlu0 %v231_v39  ;;  %v232_v40 = vmov 3   ;;  %v52_v45 = vmul.f32 0.5, %v263_v1  ;;  %s169_s18 = sshll.u32 %s233_s2, 4  ;;  %s170_s18 = int_to_ptr.vmem [resolvable:$true] %s169_s18 }
   0x6   :  { %v20_v5 = vmax.f32 %v18_v3, %v19_v4  ;;  %190 = vset.pattern.permute.xlu2 %v231_v39 }
   0x7   :  { %86 = vperm.xlu2 %190, %v257_v0   ;;  %v54_v46 = vrot.slane %v52_v45, 2 }
   0x8   :  { %v21_v6 = vrot.slane %v20_v5, 2 }
   0x9   :  { %v56_v49 = vsub.f32 %v263_v1, %v54_v46  ;;  %v57_v50 = vadd.f32 %v54_v46, %v263_v1 }
   0xa   :  { %v22_v7 = vmax.f32 %v20_v5, %v21_v6 }
   0xb   :  { %v59_v51 = vmax.f32 %v56_v49, %v57_v50  ;;  %v58_v52 = vmin.f32 %v56_v49, %v57_v50 }
   0xc   :  { %v23_v8 = vrot.slane %v22_v7, 1 }
   0xd   :  { %189 = vset.pattern.permute.xlu1 %v229_v19  ;;  %v84_v53 = vperm.slane %v59_v51, 0  ;;  %v92_v54 = vperm.slane %v59_v51, 1  ;;  %v68_v55 = vperm.slane %v58_v52, 0  ;;  %v60_v57 = vsub.f32 %v59_v51, %v58_v52 }
   0xe   :  { %v24_v9 = vmax.f32 %v22_v7, %v23_v8  ;;  %78 = vperm.xlu1 %189, %v257_v0   ;;  %v76_v58 = vperm.slane %v58_v52, 1 }
   0xf   :  { %191 = vset.pattern.permute.xlu2 %v232_v40  ;;  %v62_v5 = vrot.slane %v60_v57, 1 }
  0x10   :  { %v25_v10 = vsub.f32 %v263_v1, %v24_v9  ;;  %94 = vperm.xlu2 %191, %v257_v0  }
  0x11   :  { %v64_v9 = vmul.f32 %v62_v5, %v60_v57 }
  0x12   :  { %v26_v11 = vmul.f32 1.442695, %v25_v10 }
  0x14   :  { %193 = vpow2.f32 %v26_v11 }
  0x1a   :  { %v194_v12 = vpop.eup %193 }
  0x1b   :  { %v28_v13 = vsel %vm17_vm0, %v194_v12, 0.0 }
  0x1c   :  { %v29_v14 = vrot.slane %v28_v13, 4 }
  0x1e   :  { %v30_v15 = vadd.f32 %v29_v14, %v28_v13 }
  0x20   :  { %v31_v18 = vrot.slane %v30_v15, 2 }
  0x22   :  { %v32_v20 = vadd.f32 %v31_v18, %v30_v15 }
  0x24   :  { %v33_v21 = vrot.slane %v32_v20, 1 }
  0x26   :  { %v34_v22 = vadd.f32 %v33_v21, %v32_v20 }
  0x28   :  { %195 = vrcp.f32 %v34_v22  ;;  %v46_v25 = vand.u32 2147483648, %v34_v22  ;;  %vm40_vm1 = vweird.f32 %v34_v22  ;;  %v44_v27 = vand.u32 2147483647, %v34_v22 }
  0x2a   :  { %v47_v29 = vor.u32 1.1754944e-38, %v46_v25  ;;  %vm45_vm4 = vcmp.eq.f32.partialorder %v44_v27, 8.507059e+37 }
  0x2e   :  { %v196_v23 = vpop.eup %195 }
  0x2f   :  { %v36_v24 = vmul.f32 %v196_v23, %v34_v22  ;;  %vm41_vm2 = vweird.f32 %v196_v23 }
  0x30   :  { %vm42_vm3 = vmor %vm40_vm1, %vm41_vm2 }
  0x31   :  { %v37_v26 = vsub.f32 1.0, %v36_v24 }
  0x33   :  { %v38_v28 = vmul.f32 %v196_v23, %v37_v26 }
  0x35   :  { %v39_v30 = vadd.f32 %v196_v23, %v38_v28 }
  0x37   :  { %v43_v31 = vsel %vm42_vm3, %v196_v23, %v39_v30 }
  0x38   :  { %v48_v32 = vsel %vm45_vm4, %v47_v29, %v43_v31 }
  0x39   :  { %v49_v33 = vmul.f32 -1.0, %v48_v32 }
  0x3b   :  { %v50_v34 = vmul.f32 %v194_v12, %v49_v33 }
  0x3d   :  { %v51_v36 = vpack.c.bf16 %v50_v34, %v50_v34 }
  0x3f   :  { %v106_v37 = vsel %vm104_vm5, %v51_v36, 0 }
  0x40   :  { %115 = vmatpush.bf16.msra.mxu0 %v106_v37 }
  0x43   :  { %180 = vmatmul.msk.bf16.vlgmr.msra.gmra.mxu0 %vm100_vm6, %v67_v38 }
  0x61   :  { %v87_v47 = vpop.permute.xlu2 %86 }
  0x62   :  { %v147_v62 = vmax.f32 %v84_v53, %v87_v47  ;;  %v121_v2 = vmin.f32 %v84_v53, %v87_v47  ;;  %v89_v18 = vsub.f32 %v84_v53, %v87_v47 }
  0x64   :  { %v90_v24 = vand.u32 2147483647, %v89_v18 }
  0x6a   :  { %v95_v56 = vpop.permute.xlu2 %94 }
  0x6b   :  { %v125_v4 = vmin.f32 %v92_v54, %v95_v56  ;;  %v97_v26 = vsub.f32 %v92_v54, %v95_v56 }
  0x6d   :  { %v98_v28 = vand.u32 2147483647, %v97_v26 }
  0x75   :  { %v131_v16 = vpop.permute.xlu0 %130 }
  0x76   :  { %v133_v17 = vsub.f32 %v257_v0, %v131_v16  ;;  %v151_v0 = vmax.f32 %v92_v54, %v95_v56  ;;  %v139_v16 = vperm.slane %v64_v9, 0 }
  0x77   :  { %v72_v48 = vpop.permute.xlu1 %71 }
  0x78   :  { %135 = vrot.lane.b32.xlu0 %v133_v17, %s230_s0  ;;  %v122_v59 = vmax.f32 %v68_v55, %v72_v48  ;;  %v148_v61 = vmin.f32 %v68_v55, %v72_v48  ;;  %v74_v10 = vsub.f32 %v68_v55, %v72_v48 }
  0x7a   :  { %v149_v6 = vsub.f32 %v147_v62, %v148_v61  ;;  %v123_v7 = vsub.f32 %v121_v2, %v122_v59 }
  0x7c   :  { %v150_v12 = vmax.f32 %v149_v6, 0.0  ;;  %v124_v14 = vmax.f32 %v123_v7, 0.0 }
  0x80   :  { %v79_v60 = vpop.permute.xlu1 %78 }
  0x81   :  { %v152_v63 = vmin.f32 %v76_v58, %v79_v60  ;;  %v126_v3 = vmax.f32 %v76_v58, %v79_v60  ;;  %v81_v11 = vsub.f32 %v76_v58, %v79_v60 }
  0x83   :  { %v153_v1 = vsub.f32 %v151_v0, %v152_v63  ;;  %v127_v8 = vsub.f32 %v125_v4, %v126_v3  ;;  %v82_v19 = vand.u32 2147483647, %v81_v11 }
  0x85   :  { %v154_v13 = vmax.f32 %v153_v1, 0.0  ;;  %v128_v15 = vmax.f32 %v127_v8, 0.0 }
  0x87   :  { %v155_v20 = vmul.f32 %v154_v13, %v150_v12  ;;  %v129_v22 = vmul.f32 %v128_v15, %v124_v14 }
  0x89   :  { %197 = vrcp.f32 %v155_v20 }
  0x8f   :  { %v198_v31 = vpop.eup %197 }
  0xc0   :  { %v117_v43 = vpop.f32.mrf.mxu0 }
  0xc8   :  { %v119_v44 = vpop.f32.mrf.mxu0 }
  0xea   :  { %v136_v41 = vpop.permute.xlu0 %135 }
  0xeb   :  { %v138_v42 = vmul.f32 %v136_v41, %v133_v17  ;;  %v75_v17 = vand.u32 2147483647, %v74_v10 }
  0xed   :  { %142 = vperm.xlu0 %192, %v138_v42   ;;  %v83_v25 = vadd.f32 %v82_v19, %v75_v17 }
  0xef   :  { %v91_v29 = vadd.f32 %v90_v24, %v83_v25 }
  0xf1   :  { %v99_v32 = vadd.f32 %v98_v28, %v91_v29 }
  0xf3   :  { %v118_v36 = vadd.f32 %v117_v43, %v99_v32 }
 0x15f   :  { %v143_v21 = vpop.permute.xlu0 %142 }
 0x160   :  { %v145_v23 = vadd.f32 %v143_v21, %v139_v16 }
 0x162   :  { %v146_v27 = vsub.f32 %v145_v23, %v129_v22 }
 0x164   :  { %199 = vrcp.f32 %v146_v27  ;;  %v158_v30 = vsub.f32 %v155_v20, %v146_v27 }
 0x166   :  { %v160_v35 = vmul.f32 %v198_v31, %v158_v30 }
 0x16a   :  { %v200_v33 = vpop.eup %199 }
 0x16b   :  { %v157_v34 = vmul.f32 %v200_v33, %v129_v22 }
 0x16d   :  { %v161_v37 = vsub.f32 %v157_v34, %v160_v35 }
 0x16f   :  { %v162_v38 = vsub.f32 %v118_v36, %v161_v37 }
 0x171   :  { %163 = vst [vmem:[#allocation2] sm:$0xff] %v162_v38 }
 0x172   :  { %174 = dma.vmem_to_hbm [thread:$0]  %s170_s18, 128, %s172_s21, [#allocation3]  }
 0x173   :  { %225 = dma.done.wait [#allocation3], 128  }
 0x174   :  { %226 = vsyncadd [#allocation3], 4294967168 }
 0x175   :  { %179 = vsyncpa [#allocation3], 1 }

</bundles_post_ra>
